<compile_context>
chip_gen: v7x
topology: tpu7x:2x2x1
jax: 0.10.0
libtpu: 0.0.40
codegen_flags: <defaults>
</compile_context>

<pallas_src>
import functools
import math
from typing import NamedTuple

import jax
import jax.numpy as jnp
from jax import lax
from jax.experimental import pallas as pl
from jax.experimental.pallas import tpu as pltpu

_LANE = 1024                       # lane-dense slab width (multiple of 128)

_VMEM = pl.BlockSpec(memory_space=pltpu.MemorySpace.VMEM)
_SMEM = pl.BlockSpec(memory_space=pltpu.MemorySpace.SMEM)


# ---------------------------------------------------------------------------
# Generation-aware configuration
# ---------------------------------------------------------------------------
class _TpuConfig(NamedTuple):
    vmem_bytes: int
    two_tc: bool
    block_rows: int
    fused_max_bytes: int


@functools.lru_cache(maxsize=1)
def _tpu_config():
    vmem_bytes = 64 << 20          # conservative default (v7x per-TC VMEM)
    two_tc = False
    try:
        info = pltpu.get_tpu_info()
        vmem_bytes = int(getattr(info, "vmem_capacity_bytes", vmem_bytes))
        name = str(getattr(info, "chip_version", "")).lower()
        # v7x: 64 MiB VMEM per TensorCore, 2 TensorCores per chip.
        two_tc = ("7" in name) or (vmem_bytes <= (80 << 20))
    except Exception:              # no TPU info available -> safe defaults
        pass
    # Bigger blocks on v7x amortize the ~0.35 us per-grid-step overhead against
    # 3.2 TB/s HBM; 2 MiB blocks elsewhere (fit v5e's 16 MiB scoped default
    # even double-buffered, though we also set vmem_limit_bytes explicitly).
    block_rows = 1024 if two_tc else 512
    # Fused resident-path threshold: in + out + elementwise temporaries must
    # stay comfortably inside VMEM on every generation.
    fused_max_bytes = (8 << 20) if vmem_bytes >= (96 << 20) else (4 << 20)
    return _TpuConfig(vmem_bytes, two_tc, block_rows, fused_max_bytes)


# ---------------------------------------------------------------------------
# Slab layout helpers
# ---------------------------------------------------------------------------
def _to_slab(flat, n, small, block_rows):
    """Reshape a flat f32 vector to a lane-dense 2-D slab. -> (slab, padded)."""
    if small:
        for lane in (_LANE, 512, 256, 128):
            if n % lane == 0:
                return flat.reshape(n // lane, lane), False
        if n <= 8192:
            return flat.reshape(1, n), False
        # TODO(synk): masked epilogue instead of padding (rare fallback path).
        pad = (-n) % _LANE
        return jnp.pad(flat, (0, pad)).reshape(-1, _LANE), True
    block_elems = block_rows * _LANE
    pad = (-n) % block_elems
    if pad:
        # TODO(synk): masked epilogue instead of a full pad for the tiled path.
        flat = jnp.pad(flat, (0, pad))
    return flat.reshape(-1, _LANE), pad > 0


def _from_slab(slab, n, padded, shape):
    if padded:
        return slab.reshape(-1)[:n].reshape(shape)
    return slab.reshape(shape)


def _quant_scales(max_abs):
    """(3,) f32 = [scale_lo, scale_hi, delta]; scale_lo*scale_hi == 2**sf exactly.

    sf_hi = max(sf - 64, 0) keeps both factors finite for any finite f32 input
    (sf <= 128), so multiplying is bit-identical to dividing by delta = 2**-sf.
    """
    max_abs = jnp.asarray(max_abs, jnp.float32)
    sf = jnp.ceil(jnp.log2(max_abs))
    sf_hi = jnp.maximum(sf - 64.0, 0.0)
    sf_lo = sf - sf_hi
    return jnp.stack([jnp.exp2(sf_lo), jnp.exp2(sf_hi), jnp.exp2(-sf)]
                     ).astype(jnp.float32)


# ---------------------------------------------------------------------------
# Kernels
# ---------------------------------------------------------------------------
def _fused_quant_kernel(x_ref, o_ref, *, bound):
    """Whole array resident in VMEM: max-abs + quantize in one pass."""
    x = x_ref[...]
    m = jnp.max(jnp.abs(x), keepdims=True)                # (1, 1)
    sf = jnp.ceil(jnp.log2(m))
    sf_hi = jnp.maximum(sf - 64.0, 0.0)                   # exact two-way split
    sf_lo = sf - sf_hi
    r = jnp.floor(x * jnp.exp2(sf_lo) * jnp.exp2(sf_hi))  # = x / delta (exact)
    o_ref[...] = jnp.clip(r, -bound, bound - 1.0) * jnp.exp2(-sf)


def _scaled_quant_kernel(scale_ref, x_ref, o_ref, *, bound):
    """Quantize-only pass; [scale_lo, scale_hi, delta] scalars come from SMEM."""
    lo = scale_ref[0]
    hi = scale_ref[1]
    delta = scale_ref[2]
    r = jnp.floor(x_ref[...] * lo * hi)                   # multiplies, no divide
    o_ref[...] = jnp.clip(r, -bound, bound - 1.0) * delta


def _maxabs_kernel(x_ref, o_ref):
    """Per-core (8, lane) running max over big tiles.

    o_ref is indexed only by the leading (parallel) grid axis, so it stays
    resident across the inner (arbitrary) reduction axis.  Each block is
    reduced to 8 rows with purely elementwise vreg maxima (no cross-sublane /
    XLU reduce per step); the final 8 x lane reduce happens in the XLA glue.
    """
    @pl.when(pl.program_id(1) == 0)
    def _():
        o_ref[...] = jnp.zeros_like(o_ref)                # identity for max(|x|)
    a = jnp.abs(x_ref[...])                               # (block_rows, lane)
    a8 = jnp.max(a.reshape(a.shape[0] // 8, 8, a.shape[1]), axis=0)
    o_ref[...] = jnp.maximum(o_ref[...], a8)


def _sign_kernel(x_ref, o_ref):
    o_ref[...] = jnp.sign(x_ref[...]) - 1.0


# ---------------------------------------------------------------------------
# activation_quantization forward (Quant.linear)
# ---------------------------------------------------------------------------
def activation_quantization_forward(x, bits=8, *, max_abs=None):
    """Pallas forward of Quant.linear.

    If `max_abs` (scalar = max|x|) is supplied, only the quantize pass runs in
    Pallas (scales passed via SMEM); otherwise max|x| is computed on-chip
    (fused in one kernel for small inputs, a separate tiled pass for large).
    """
    assert bits >= 1, bits
    cfg = _tpu_config()
    shape = x.shape
    flat = x.astype(jnp.float32).reshape(-1)
    n = flat.shape[0]
    small = n * 4 <= cfg.fused_max_bytes
    slab, padded = _to_slab(flat, n, small, cfg.block_rows)
    rows, lane = slab.shape
    slab_bytes = rows * lane * 4

    # ---------------- bits == 1: out = sign(x) - 1 ----------------
    if bits == 1:
        if small:
            out = pl.pallas_call(
                _sign_kernel,
                out_shape=jax.ShapeDtypeStruct(slab.shape, jnp.float32),
                in_specs=[_VMEM], out_specs=_VMEM,
                compiler_params=pltpu.CompilerParams(
                    vmem_limit_bytes=4 * slab_bytes + (2 << 20)),
            )(slab)
        else:
            nblk = rows // cfg.block_rows
            blk_bytes = cfg.block_rows * lane * 4
            out = pl.pallas_call(
                _sign_kernel,
                out_shape=jax.ShapeDtypeStruct(slab.shape, jnp.float32),
                grid_spec=pltpu.PrefetchScalarGridSpec(
                    num_scalar_prefetch=0, grid=(nblk,),
                    in_specs=[pl.BlockSpec((cfg.block_rows, lane),
                                           lambda i: (i, 0))],
                    out_specs=pl.BlockSpec((cfg.block_rows, lane),
                                           lambda i: (i, 0))),
                compiler_params=pltpu.CompilerParams(
                    dimension_semantics=("parallel",),
                    vmem_limit_bytes=6 * blk_bytes + (2 << 20)),
            )(slab)
        return _from_slab(out, n, padded, shape)

    bound = float(2.0 ** (bits - 1))

    # ---------------- small, no precomputed max: fused single-block ----------------
    if small and max_abs is None:
        out = pl.pallas_call(
            functools.partial(_fused_quant_kernel, bound=bound),
            out_shape=jax.ShapeDtypeStruct(slab.shape, jnp.float32),
            in_specs=[_VMEM], out_specs=_VMEM,
            compiler_params=pltpu.CompilerParams(
                vmem_limit_bytes=6 * slab_bytes + (2 << 20)),
        )(slab)
        return _from_slab(out, n, padded, shape)

    # ---------------- max(|x|): Pallas tiled pass (only if not supplied) ----------------
    if max_abs is None:
        nblk = rows // cfg.block_rows
        ncores = 2 if (cfg.two_tc and nblk % 2 == 0) else 1
        # TODO(synk): uneven 2-core split for odd nblk on v7x.
        bpc = nblk // ncores
        blk_bytes = cfg.block_rows * lane * 4
        partials = pl.pallas_call(
            _maxabs_kernel,
            out_shape=jax.ShapeDtypeStruct((8, ncores * lane), jnp.float32),
            grid_spec=pltpu.PrefetchScalarGridSpec(
                num_scalar_prefetch=0, grid=(ncores, bpc),
                in_specs=[pl.BlockSpec((cfg.block_rows, lane),
                                       lambda c, i: (c * bpc + i, 0))],
                out_specs=pl.BlockSpec((8, lane), lambda c, i: (0, c))),
            compiler_params=pltpu.CompilerParams(
                dimension_semantics=("parallel", "arbitrary"),
                vmem_limit_bytes=4 * blk_bytes + (2 << 20)),
        )(slab)
        max_abs = jnp.max(partials)        # zero padding is the identity here

    scales = _quant_scales(max_abs)        # (3,) f32 -> SMEM

    # ---------------- quantize pass: x * 2**sf via two exact multiplies ----------------
    if small:
        out = pl.pallas_call(
            functools.partial(_scaled_quant_kernel, bound=bound),
            out_shape=jax.ShapeDtypeStruct(slab.shape, jnp.float32),
            in_specs=[_SMEM, _VMEM], out_specs=_VMEM,
            compiler_params=pltpu.CompilerParams(
                vmem_limit_bytes=6 * slab_bytes + (2 << 20)),
        )(scales, slab)
    else:
        nblk = rows // cfg.block_rows
        blk_bytes = cfg.block_rows * lane * 4
        out = pl.pallas_call(
            functools.partial(_scaled_quant_kernel, bound=bound),
            out_shape=jax.ShapeDtypeStruct(slab.shape, jnp.float32),
            grid_spec=pltpu.PrefetchScalarGridSpec(
                num_scalar_prefetch=0, grid=(nblk,),
                in_specs=[_SMEM,
                          pl.BlockSpec((cfg.block_rows, lane), lambda i: (i, 0))],
                out_specs=pl.BlockSpec((cfg.block_rows, lane), lambda i: (i, 0))),
            compiler_params=pltpu.CompilerParams(
                dimension_semantics=("parallel",),
                vmem_limit_bytes=8 * blk_bytes + (2 << 20)),
        )(scales, slab)
    return _from_slab(out, n, padded, shape)


# ---------------------------------------------------------------------------
# Pure-jnp reference for the quantization op (mirrors Quant.linear)
# ---------------------------------------------------------------------------
def quant_reference(x, bits=8):
    if bits == 1:
        return jnp.sign(x) - 1.0
    sf = jnp.ceil(jnp.log2(jnp.max(jnp.abs(x))))
    delta = jnp.exp2(-sf)
    bound = float(2.0 ** (bits - 1))
    return jnp.clip(jnp.floor(x / delta), -bound, bound - 1.0) * delta


# ---------------------------------------------------------------------------
# FixedLayerConvNet forward (conv / pool / fc via XLA, quant via Pallas)
# ---------------------------------------------------------------------------
# TODO(synk): conv2d / maxpool / linear are left to XLA (lax.conv, reduce_window,
# matmul), which is already MXU-optimal; only the custom quantization op is a
# hand-written Pallas kernel.  bn1/bn2 are defined but never used in the
# reference forward, so they are omitted here as well.
def init_convnet_params(key):
    ks = jax.random.split(key, 8)

    def u(k, shp, fan_in):
        b = 1.0 / math.sqrt(fan_in)
        return jax.random.uniform(k, shp, jnp.float32, -b, b)

    return {
        "conv1_w": u(ks[0], (32, 3, 5, 5), 3 * 25),
        "conv1_b": u(ks[1], (32,), 3 * 25),
        "conv2_w": u(ks[2], (64, 32, 3, 3), 32 * 9),
        "conv2_b": u(ks[3], (64,), 32 * 9),
        "fc1_w": u(ks[4], (512, 64 * 8 * 8), 64 * 8 * 8),
        "fc1_b": u(ks[5], (512,), 64 * 8 * 8),
        "fc2_w": u(ks[6], (10, 512), 512),
        "fc2_b": u(ks[7], (10,), 512),
    }


def _conv2d(x, w, b, padding):
    y = lax.conv_general_dilated(
        x, w, window_strides=(1, 1),
        padding=((padding, padding), (padding, padding)),
        dimension_numbers=("NCHW", "OIHW", "NCHW"))
    return y + b[None, :, None, None]


def _maxpool2(x):
    return lax.reduce_window(x, -jnp.inf, lax.max,
                             window_dimensions=(1, 1, 2, 2),
                             window_strides=(1, 1, 2, 2),
                             padding="VALID")


def fixed_layer_convnet_forward(params, x, quant_fn, input_quant_fn=None):
    qin = input_quant_fn if input_quant_fn is not None else quant_fn
    x = qin(x, 8)
    x = _conv2d(x, params["conv1_w"], params["conv1_b"], 2)
    x = jax.nn.relu(x)
    x = _maxpool2(jax.nn.relu(x))
    x = quant_fn(x, 8)
    x = _conv2d(x, params["conv2_w"], params["conv2_b"], 1)
    x = jax.nn.relu(x)
    x = _maxpool2(jax.nn.relu(x))
    x = x.reshape(x.shape[0], -1)          # flatten
    x = quant_fn(x, 8)
    x = x @ params["fc1_w"].T + params["fc1_b"]
    x = jax.nn.relu(x)
    x = quant_fn(x, 8)
    x = x @ params["fc2_w"].T + params["fc2_b"]
    return x


# ---------------------------------------------------------------------------
if __name__ == "__main__":
    key = jax.random.PRNGKey(0)
    kx, kp, kbig = jax.random.split(key, 3)

    # Input shape implied by the module (conv1 has 3 in-channels, fc1 expects
    # 64*8*8 -> 32x32 spatial after two 2x maxpools).  Small batch = 2.
    x = jax.random.normal(kx, (2, 3, 32, 32), dtype=jnp.float32) * 3.0

    # --- quant kernel, small fused path (bits = 8, max|x| computed in-kernel) ---
    out = jax.block_until_ready(activation_quantization_forward(x, bits=8))
    ref = quant_reference(x, bits=8)
    assert out.shape == x.shape and out.dtype == jnp.float32
    assert jnp.allclose(out, ref, atol=1e-5), "fused quant path mismatch"

    # --- quant kernel, quantize-only path with wrapper-side max|x| ---
    out_s = jax.block_until_ready(
        activation_quantization_forward(x, bits=8, max_abs=jnp.max(jnp.abs(x))))
    assert jnp.allclose(out_s, ref, atol=1e-5), "scaled quant path mismatch"

    # --- quant kernel, bits == 1 path ---
    out1 = jax.block_until_ready(activation_quantization_forward(x, bits=1))
    assert jnp.allclose(out1, quant_reference(x, bits=1), atol=1e-6), "bits=1 mismatch"

    # --- quant kernel, large two-pass tiled path (32 MiB activation) ---
    xb = jax.random.normal(kbig, (8, 64, 128, 128), dtype=jnp.float32) * 0.37
    outb = jax.block_until_ready(activation_quantization_forward(xb, bits=8))
    assert jnp.allclose(outb, quant_reference(xb, bits=8), atol=1e-5), \
        "tiled quant path mismatch"

    # --- full FixedLayerConvNet forward with the Pallas quant kernel ---
    params = init_convnet_params(kp)

    def _pallas_quant_act(a, bits):
        # max|x| via plain jnp so XLA (under jit) fuses the reduction into the
        # producing relu / maxpool epilogue; Pallas only does the quantize pass.
        return activation_quantization_forward(a, bits, max_abs=jnp.max(jnp.abs(a)))

    pallas_forward = jax.jit(functools.partial(
        fixed_layer_convnet_forward,
        quant_fn=_pallas_quant_act,
        input_quant_fn=activation_quantization_forward))
    logits = jax.block_until_ready(pallas_forward(params, x))
    logits_ref = fixed_layer_convnet_forward(params, x, quant_reference)
    assert logits.shape == (2, 10)
    assert jnp.allclose(logits, logits_ref, atol=1e-3, rtol=1e-3), "convnet mismatch"

    print("KERNEL_OK")
</pallas_src>

<mosaic_0001>
module attributes {stable_mosaic.version = 11 : i64} {
  func.func @_fused_quant_kernel(%arg0: memref<6x1024xf32, #tpu.memory_space<vmem>>, %arg1: memref<6x1024xf32, #tpu.memory_space<vmem>>) attributes {dimension_semantics = [], scalar_prefetch = 0 : i64, scratch_operands = 0 : i64, tpu.core_type = #tpu.core_type<tc>} {
    %c0 = arith.constant 0 : index
    %c0_0 = arith.constant 0 : index
    %0 = vector.load %arg0[%c0, %c0_0] : memref<6x1024xf32, #tpu.memory_space<vmem>>, vector<6x1024xf32>
    %1 = math.absf %0 : vector<6x1024xf32>
    %2 = vector.shape_cast %1 : vector<6x1024xf32> to vector<1x6x1024xf32>
    %cst = arith.constant dense<0xFF800000> : vector<1xf32>
    %3 = vector.multi_reduction <maximumf>, %2, %cst [1, 2] : vector<1x6x1024xf32> to vector<1xf32>
    %4 = vector.shape_cast %3 : vector<1xf32> to vector<1x1x1xf32>
    %5 = vector.extract %4[0, 0, 0] : f32 from vector<1x1x1xf32>
    %6 = vector.broadcast %5 : f32 to vector<1x1xf32>
    %7 = math.log %6 : vector<1x1xf32>
    %cst_1 = arith.constant 2.000000e+00 : f32
    %8 = math.log %cst_1 : f32
    %9 = vector.broadcast %8 : f32 to vector<1x1xf32>
    %10 = arith.divf %7, %9 : vector<1x1xf32>
    %11 = math.ceil %10 : vector<1x1xf32>
    %cst_2 = arith.constant 6.400000e+01 : f32
    %12 = vector.broadcast %cst_2 : f32 to vector<1x1xf32>
    %13 = arith.subf %11, %12 : vector<1x1xf32>
    %cst_3 = arith.constant 0.000000e+00 : f32
    %14 = vector.broadcast %cst_3 : f32 to vector<1x1xf32>
    %15 = arith.maximumf %13, %14 : vector<1x1xf32>
    %16 = arith.subf %11, %15 : vector<1x1xf32>
    %17 = math.exp2 %16 : vector<1x1xf32>
    %18 = vector.broadcast %17 : vector<1x1xf32> to vector<6x1024xf32>
    %19 = arith.mulf %0, %18 : vector<6x1024xf32>
    %20 = math.exp2 %15 : vector<1x1xf32>
    %21 = vector.broadcast %20 : vector<1x1xf32> to vector<6x1024xf32>
    %22 = arith.mulf %19, %21 : vector<6x1024xf32>
    %23 = math.floor %22 : vector<6x1024xf32>
    %cst_4 = arith.constant -1.280000e+02 : f32
    %cst_5 = arith.constant 1.270000e+02 : f32
    %24 = vector.broadcast %cst_4 : f32 to vector<6x1024xf32>
    %25 = arith.maximumf %24, %23 : vector<6x1024xf32>
    %26 = vector.broadcast %cst_5 : f32 to vector<6x1024xf32>
    %27 = arith.minimumf %26, %25 : vector<6x1024xf32>
    %cst_6 = arith.constant 0.000000e+00 : f32
    %28 = vector.broadcast %cst_6 : f32 to vector<1x1xf32>
    %29 = arith.subf %28, %11 : vector<1x1xf32>
    %30 = math.exp2 %29 : vector<1x1xf32>
    %31 = vector.broadcast %30 : vector<1x1xf32> to vector<6x1024xf32>
    %32 = arith.mulf %27, %31 : vector<6x1024xf32>
    %c0_7 = arith.constant 0 : index
    %c0_8 = arith.constant 0 : index
    %33 = vector.load %arg1[%c0_7, %c0_8] : memref<6x1024xf32, #tpu.memory_space<vmem>>, vector<6x1024xf32>
    tpu.vector_store %arg1[%c0_7, %c0_8], %32 {strides = array<i32>} : memref<6x1024xf32, #tpu.memory_space<vmem>>, vector<6x1024xf32>,
    return
  }
}

</mosaic_0001>

<bundles_post_ra>
// kernel: tpu_custom_call.1
= control target key start
LH: loop header
LB: loop body
LE: loop exit
PB: predicated region body
PF: predicated region fallthrough
CT: control target
= control target key end

     0   :  { %6 = vsyncpa [#allocation3], 0  ;;  %s251_s0 = inlined_call_operand.hbm [shape: f32[6,1024], index: 0, kind: input, shape index: {}]   ;;  %s252_s1 = inlined_call_operand.hbm [shape: f32[6,1024], index: 1, kind: output, shape index: {}]  }
   0x1   :  { %7 = vsyncpa [#allocation4], 0  ;;  %s207_s6 = smov [#allocation2]   ;;  %s159_s10 = scalar_lea.hbm %s251_s0, 1024 }
   0x2   :  { %s14_s7 = sshll.u32 %s207_s6, 4  ;;  %p160_p0 = scmp.ne.s32.totalorder %s251_s0, %s159_s10  ;;  %s15_s7 = int_to_ptr.vmem [resolvable:$true] %s14_s7 }
   0x3   :  { %p163_p1 = scmp.lt.u32.totalorder %s159_s10, %s251_s0 }
   0x5   :  { %p165_p2 = pnand %p163_p1, %p160_p0 }
   0x7   :  { %168 = shalt.err (!%p165_p2)
}
   0x8   :  { %s169_s15 = scalar_lea.vmem %s15_s7, 1024  ;;  %p174_p4 = scmp.lt.s32.totalorder %s15_s7, %s15_s7 }
   0x9   :  { %p170_p3 = scmp.ne.s32.totalorder %s15_s7, %s169_s15  ;;  %p175_p5 = scmp.lt.s32.totalorder %s169_s15, %s169_s15 }
   0xb   :  { %p176_p6 = por %p175_p5, %p174_p4 }
   0xd   :  { %p177_p7 = pnand %p176_p6, %p170_p3 }
   0xf   :  { %180 = shalt.err (!%p177_p7)
}
  0x10   :  { %17 = dma.hbm_to_vmem [thread:$0]  %s251_s0, 1024, %s15_s7, [#allocation3]  }
  0x11   :  { %203 = dma.done.wait [#allocation3], 1024  }
  0x12   :  { %204 = vsyncadd [#allocation3], 4294966272  ;;  %vm37_vm0 = vcmask 1045504   ;;  %v21_v0 = vld [vmem:[#allocation2] sm:$0x3f]  ;;  %s208_s18 = smov [#allocation5]  }
  0x13   :  { %v22_v1 = vld [vmem:[#allocation2 + $0x8] sm:$0x3f]  ;;  %v23_v2 = vld [vmem:[#allocation2 + $0x10] sm:$0x3f]  ;;  %v24_v3 = vld [vmem:[#allocation2 + $0x18] sm:$0x3f] }
  0x14   :  { %v25_v4 = vld [vmem:[#allocation2 + $0x20] sm:$0x3f]  ;;  %v26_v5 = vld [vmem:[#allocation2 + $0x28] sm:$0x3f]  ;;  %v27_v6 = vld [vmem:[#allocation2 + $0x30] sm:$0x3f] }
  0x15   :  { %v28_v7 = vld [vmem:[#allocation2 + $0x38] sm:$0x3f]  ;;  %v29_v8 = vand.u32 2147483647, %v21_v0  ;;  %v30_v9 = vand.u32 2147483647, %v22_v1 }
  0x16   :  { %v31_v10 = vand.u32 2147483647, %v23_v2  ;;  %v32_v11 = vand.u32 2147483647, %v24_v3  ;;  %v33_v12 = vand.u32 2147483647, %v25_v4 }
  0x17   :  { %v34_v13 = vand.u32 2147483647, %v26_v5  ;;  %v35_v14 = vand.u32 2147483647, %v27_v6  ;;  %v36_v15 = vand.u32 2147483647, %v28_v7 }
  0x18   :  { %v38_v16 = vsel %vm37_vm0, %v29_v8, -inf  ;;  %v39_v17 = vsel %vm37_vm0, %v30_v9, -inf  ;;  %v40_v18 = vsel %vm37_vm0, %v31_v10, -inf  ;;  %v41_v19 = vsel %vm37_vm0, %v32_v11, -inf  ;;  %s137_s19 = sshll.u32 %s208_s18, 4  ;;  %s138_s19 = int_to_ptr.vmem [resolvable:$true] %s137_s19 }
  0x19   :  { %v42_v20 = vsel %vm37_vm0, %v33_v12, -inf  ;;  %v44_v21 = vsel %vm37_vm0, %v34_v13, -inf  ;;  %v46_v22 = vsel %vm37_vm0, %v35_v14, -inf  ;;  %v48_v26 = vsel %vm37_vm0, %v36_v15, -inf  ;;  %s181_s20 = scalar_lea.vmem %s138_s19, 1024  ;;  %p186_p9 = scmp.lt.s32.totalorder %s138_s19, %s138_s19 }
  0x1a   :  { %v43_v23 = vmax.f32 %v38_v16, %v42_v20  ;;  %v45_v24 = vmax.f32 %v39_v17, %v44_v21  ;;  %v47_v25 = vmax.f32 %v40_v18, %v46_v22  ;;  %v49_v27 = vmax.f32 %v41_v19, %v48_v26  ;;  %p182_p8 = scmp.ne.s32.totalorder %s138_s19, %s181_s20  ;;  %p187_p10 = scmp.lt.s32.totalorder %s181_s20, %s181_s20 }
  0x1c   :  { %v50_v28 = vmax.f32 %v43_v23, %v45_v24  ;;  %v51_v29 = vmax.f32 %v47_v25, %v49_v27  ;;  %p188_p11 = por %p187_p10, %p186_p9 }
  0x1e   :  { %v52_v30 = vmax.f32 %v50_v28, %v51_v29  ;;  %p189_p12 = pnand %p188_p11, %p182_p8 }
  0x20   :  { %53 = vmax.xlane.f32.xlu0 %v52_v30 }
  0xad   :  { %v54_v31 = vpop.xlane.xlu0 %53 }
  0xae   :  { %v55_v32 = vrot.slane %v54_v31, 4 }
  0xb0   :  { %v56_v33 = vmax.f32 %v54_v31, %v55_v32 }
  0xb2   :  { %v57_v34 = vrot.slane %v56_v33, 2 }
  0xb4   :  { %v58_v35 = vmax.f32 %v56_v33, %v57_v34 }
  0xb6   :  { %v59_v36 = vrot.slane %v58_v35, 1 }
  0xb8   :  { %v60_v37 = vmax.f32 %v58_v35, %v59_v36 }
  0xba   :  { %147 = vpush %v60_v37 }
  0xeb   :  { %s148_s0 = spop %147 }
  0xec   :  { %v62_v38 = vstv %s148_s0 }
  0xed   :  { %151 = vlog2.f32 %v62_v38 }
  0xf7   :  { %v152_v39 = vpop.eup %151 }
  0xf8   :  { %v64_v40 = vmul.f32 0.6931472, %v152_v39 }
  0xfa   :  { %v66_v41 = vmul.f32 1.442695, %v64_v40 }
  0xfc   :  { %v67_v42 = vceil.f32 %v66_v41 }
  0xfe   :  { %v146_v43 = vadd.f32 -64.0, %v67_v42  ;;  %v113_v46 = vsub.f32 0.0, %v67_v42 }
 0x100   :  { %v69_v44 = vmax.f32 %v146_v43, 0.0 }
 0x102   :  { %v70_v45 = vsub.f32 %v67_v42, %v69_v44 }
 0x104   :  { %153 = vpow2.f32 %v70_v45 }
 0x105   :  { %155 = vpow2.f32 %v69_v44 }
 0x106   :  { %157 = vpow2.f32 %v113_v46 }
 0x10e   :  { %v154_v47 = vpop.eup %153 }
 0x10f   :  { %v72_v48 = vmul.f32 %v154_v47, %v21_v0  ;;  %v73_v49 = vmul.f32 %v154_v47, %v22_v1  ;;  %v74_v50 = vmul.f32 %v154_v47, %v23_v2  ;;  %v75_v51 = vmul.f32 %v154_v47, %v24_v3  ;;  %v156_v52 = vpop.eup %155 }
 0x110   :  { %v76_v53 = vmul.f32 %v154_v47, %v25_v4  ;;  %v77_v54 = vmul.f32 %v154_v47, %v26_v5  ;;  %v78_v55 = vmul.f32 %v154_v47, %v27_v6  ;;  %v79_v56 = vmul.f32 %v154_v47, %v28_v7  ;;  %v158_v21 = vpop.eup %157 }
 0x111   :  { %v81_v57 = vmul.f32 %v156_v52, %v72_v48  ;;  %v82_v58 = vmul.f32 %v156_v52, %v73_v49  ;;  %v83_v59 = vmul.f32 %v156_v52, %v74_v50  ;;  %v84_v60 = vmul.f32 %v156_v52, %v75_v51 }
 0x112   :  { %v85_v61 = vmul.f32 %v156_v52, %v76_v53  ;;  %v86_v62 = vmul.f32 %v156_v52, %v77_v54  ;;  %v87_v63 = vmul.f32 %v156_v52, %v78_v55  ;;  %v88_v8 = vmul.f32 %v156_v52, %v79_v56 }
 0x113   :  { %v89_v9 = vfloor.f32 %v81_v57  ;;  %v90_v10 = vfloor.f32 %v82_v58  ;;  %v91_v11 = vfloor.f32 %v83_v59  ;;  %v92_v0 = vfloor.f32 %v84_v60 }
 0x114   :  { %v93_v1 = vfloor.f32 %v85_v61  ;;  %v94_v2 = vfloor.f32 %v86_v62  ;;  %v95_v3 = vfloor.f32 %v87_v63  ;;  %v96_v12 = vfloor.f32 %v88_v8 }
 0x115   :  { %v97_v4 = vmax.f32 %v89_v9, -128.0  ;;  %v98_v5 = vmax.f32 %v90_v10, -128.0  ;;  %v99_v6 = vmax.f32 %v91_v11, -128.0  ;;  %v100_v7 = vmax.f32 %v92_v0, -128.0 }
 0x116   :  { %v101_v13 = vmax.f32 %v93_v1, -128.0  ;;  %v102_v14 = vmax.f32 %v94_v2, -128.0  ;;  %v103_v15 = vmax.f32 %v95_v3, -128.0  ;;  %v104_v16 = vmax.f32 %v96_v12, -128.0 }
 0x117   :  { %v105_v17 = vmin.f32 %v97_v4, 127.0  ;;  %v106_v18 = vmin.f32 %v98_v5, 127.0  ;;  %v107_v19 = vmin.f32 %v99_v6, 127.0  ;;  %v108_v20 = vmin.f32 %v100_v7, 127.0 }
 0x118   :  { %v109_v22 = vmin.f32 %v101_v13, 127.0  ;;  %v110_v23 = vmin.f32 %v102_v14, 127.0  ;;  %v111_v24 = vmin.f32 %v103_v15, 127.0  ;;  %v112_v25 = vmin.f32 %v104_v16, 127.0 }
 0x119   :  { %v115_v26 = vmul.f32 %v158_v21, %v105_v17  ;;  %v116_v27 = vmul.f32 %v158_v21, %v106_v18  ;;  %v117_v28 = vmul.f32 %v158_v21, %v107_v19  ;;  %v118_v29 = vmul.f32 %v158_v21, %v108_v20 }
 0x11a   :  { %v119_v30 = vmul.f32 %v158_v21, %v109_v22  ;;  %v120_v31 = vmul.f32 %v158_v21, %v110_v23  ;;  %v121_v32 = vmul.f32 %v158_v21, %v111_v24  ;;  %v122_v33 = vmul.f32 %v158_v21, %v112_v25 }
 0x11b   :  { %123 = vst [vmem:[#allocation5] sm:$0x3f] %v115_v26  ;;  %124 = vst [vmem:[#allocation5 + $0x8] sm:$0x3f] %v116_v27 }
 0x11c   :  { %125 = vst [vmem:[#allocation5 + $0x10] sm:$0x3f] %v117_v28  ;;  %126 = vst [vmem:[#allocation5 + $0x18] sm:$0x3f] %v118_v29 }
 0x11d   :  { %127 = vst [vmem:[#allocation5 + $0x20] sm:$0x3f] %v119_v30  ;;  %128 = vst [vmem:[#allocation5 + $0x28] sm:$0x3f] %v120_v31 }
 0x11e   :  { %129 = vst [vmem:[#allocation5 + $0x30] sm:$0x3f] %v121_v32  ;;  %130 = vst [vmem:[#allocation5 + $0x38] sm:$0x3f] %v122_v33 }
 0x11f   :  { %192 = shalt.err (!%p189_p12)
}
 0x120   :  { %s193_s23 = scalar_lea.hbm %s252_s1, 1024 }
 0x121   :  { %p194_p13 = scmp.ne.s32.totalorder %s252_s1, %s193_s23  ;;  %p197_p0 = scmp.lt.u32.totalorder %s193_s23, %s252_s1 }
 0x123   :  { %p199_p1 = pnand %p197_p0, %p194_p13 }
 0x125   :  { %202 = shalt.err (!%p199_p1)
}
 0x126   :  { %140 = dma.vmem_to_hbm [thread:$0]  %s138_s19, 1024, %s252_s1, [#allocation4]  }
 0x127   :  { %205 = dma.done.wait [#allocation4], 1024  }
 0x128   :  { %206 = vsyncadd [#allocation4], 4294966272 }
 0x129   :  { %144 = vsyncpa [#allocation3], 1 }
 0x12a   :  { %145 = vsyncpa [#allocation4], 1 }

</bundles_post_ra>
